<compile_context>
chip_gen: v7x
topology: tpu7x:2x2x1
jax: 0.10.0
libtpu: 0.0.40
codegen_flags: <defaults>
</compile_context>

<pallas_src>
import functools

import jax
import jax.numpy as jnp
from jax import lax
from jax.experimental import pallas as pl
from jax.experimental.pallas import tpu as pltpu


def _rsb_kernel(x_ref, w1_ref, b1_ref, w2_ref, b2_ref, edge_ref, o_ref,
                xe_ref, p_ref, *, H, W, C, halo, scale):
    """Fused conv3x3 -> relu -> conv3x3 -> *scale for one image.

    Layout: channels on sublanes, flattened H*W on lanes (lane-dense).

    x_ref    : (1, C, H*W)            input image, flattened spatial
    w*_ref   : (C, 9*C)               im2col weights, W[co, (kh*3+kw)*C + ci]
    b*_ref   : (C, 1)                 biases
    edge_ref : (2, H*W) f32           keep-masks: row0 = (col != 0),
                                      row1 = (col != W-1)
    o_ref    : (1, C, H*W)            output
    xe_ref   : (C, halo + H*W + halo) f32 scratch, zero halos on both ends
    p_ref    : (9*C, H*W)             f32 scratch, im2col patch slab
    """
    HW = H * W
    not_left = edge_ref[0:1, :]     # (1, HW): 0 where col == 0
    not_right = edge_ref[1:2, :]    # (1, HW): 0 where col == W-1

    # Zero the scratch each step: the halos stand in for the convs' zero
    # padding (interior is overwritten below). halo >= W+1 so every vertical
    # out-of-image tap lands in the zero halo.
    xe_ref[...] = jnp.zeros_like(xe_ref)

    def conv3x3(src, w_ref, b_ref):
        """3x3 conv (padding=1) of src (C, HW) as one (C,9C)@(9C,HW) matmul."""
        xe_ref[:, halo:halo + HW] = src          # lane-aligned interior store
        for kh in range(3):
            for kw in range(3):
                d = (kh - 1) * W + (kw - 1)
                sl = xe_ref[:, halo + d:halo + d + HW]   # shifted tap slab
                if kw == 0:        # reads column c-1: invalid where c == 0
                    sl = sl * not_left
                elif kw == 2:      # reads column c+1: invalid where c == W-1
                    sl = sl * not_right
                t = kh * 3 + kw
                p_ref[t * C:(t + 1) * C, :] = sl
        return jnp.dot(w_ref[...], p_ref[...],
                       preferred_element_type=jnp.float32) + b_ref[...]

    # conv_first + relu
    y = jnp.maximum(conv3x3(x_ref[0].astype(jnp.float32), w1_ref, b1_ref), 0.0)
    # conv_last + scale
    out = conv3x3(y, w2_ref, b2_ref)
    o_ref[0] = (out * scale).astype(o_ref.dtype)


def rsb_forward(x_nchw, w1, b1, w2, b2, scale):
    """x_nchw: (B, C, H, W); w*: (Cout, Cin, 3, 3) PyTorch OIHW; b*: (C,)."""
    B, C, H, W = x_nchw.shape
    HW = H * W
    halo = ((W + 1 + 127) // 128) * 128   # >= W+1, lane-aligned interior offset

    # Contiguous reshape only (no HBM pass): spatial goes onto the lane axis.
    x_flat = x_nchw.reshape(B, C, HW)
    # im2col weight slabs: (Cout, Cin, kh, kw) -> (Cout, kh, kw, Cin) -> (C, 9C)
    w1_2d = jnp.transpose(w1, (0, 2, 3, 1)).reshape(C, 9 * C).astype(jnp.float32)
    w2_2d = jnp.transpose(w2, (0, 2, 3, 1)).reshape(C, 9 * C).astype(jnp.float32)
    b1_2d = b1.reshape(C, 1).astype(jnp.float32)
    b2_2d = b2.reshape(C, 1).astype(jnp.float32)

    # Precomputed column-edge keep-masks (1 = keep, 0 = zero), shape (2, HW).
    col = jnp.arange(HW, dtype=jnp.int32) % W
    edge = jnp.stack([col != 0, col != (W - 1)]).astype(jnp.float32)

    kern = functools.partial(_rsb_kernel, H=H, W=W, C=C, halo=halo,
                             scale=float(scale))
    out_flat = pl.pallas_call(
        kern,
        out_shape=jax.ShapeDtypeStruct((B, C, HW), x_nchw.dtype),
        grid=(B,),
        in_specs=[
            pl.BlockSpec((1, C, HW), lambda b: (b, 0, 0)),
            pl.BlockSpec((C, 9 * C), lambda b: (0, 0)),
            pl.BlockSpec((C, 1), lambda b: (0, 0)),
            pl.BlockSpec((C, 9 * C), lambda b: (0, 0)),
            pl.BlockSpec((C, 1), lambda b: (0, 0)),
            pl.BlockSpec((2, HW), lambda b: (0, 0)),
        ],
        out_specs=pl.BlockSpec((1, C, HW), lambda b: (b, 0, 0)),
        scratch_shapes=[
            pltpu.VMEM((C, HW + 2 * halo), jnp.float32),   # padded image slab
            pltpu.VMEM((9 * C, HW), jnp.float32),          # im2col patch slab
        ],
        compiler_params=pltpu.CompilerParams(
            dimension_semantics=("parallel",)),
    )(x_flat, w1_2d, b1_2d, w2_2d, b2_2d, edge)
    return out_flat.reshape(B, C, H, W)


def rsb_reference(x, w1, b1, w2, b2, scale):
    """Pure-JAX reference matching torch semantics (NCHW, OIHW)."""
    dn = ("NCHW", "OIHW", "NCHW")
    y = lax.conv_general_dilated(x, w1, (1, 1), ((1, 1), (1, 1)),
                                 dimension_numbers=dn) + b1[None, :, None, None]
    y = jnp.maximum(y, 0.0)
    y = lax.conv_general_dilated(y, w2, (1, 1), ((1, 1), (1, 1)),
                                 dimension_numbers=dn) + b2[None, :, None, None]
    return y * scale


if __name__ == "__main__":
    B, C, H, W = 2, 4, 16, 16
    K = 3
    scale = 0.1

    key = jax.random.PRNGKey(0)
    kx, kw1, kb1, kw2, kb2 = jax.random.split(key, 5)
    x = jax.random.normal(kx, (B, C, H, W), dtype=jnp.float32)
    # Deterministic synthetic parameters (shapes from nn.Conv2d(C, C, 3, 1, 1)).
    w1 = 0.1 * jax.random.normal(kw1, (C, C, K, K), dtype=jnp.float32)
    b1 = 0.1 * jax.random.normal(kb1, (C,), dtype=jnp.float32)
    w2 = 0.1 * jax.random.normal(kw2, (C, C, K, K), dtype=jnp.float32)
    b2 = 0.1 * jax.random.normal(kb2, (C,), dtype=jnp.float32)

    out = jax.block_until_ready(rsb_forward(x, w1, b1, w2, b2, scale))
    ref = jax.block_until_ready(rsb_reference(x, w1, b1, w2, b2, scale))
    assert out.shape == (B, C, H, W)
    assert jnp.allclose(out, ref, atol=1e-5, rtol=1e-5), "mismatch vs reference"
    print("KERNEL_OK")
</pallas_src>

<mosaic_0001>
module attributes {stable_mosaic.version = 11 : i64} {
  func.func @_rsb_kernel(%arg0: i32, %arg1: memref<1x4x256xf32, #tpu.memory_space<vmem>>, %arg2: memref<4x36xf32, #tpu.memory_space<vmem>>, %arg3: memref<4x1xf32, #tpu.memory_space<vmem>>, %arg4: memref<4x36xf32, #tpu.memory_space<vmem>>, %arg5: memref<4x1xf32, #tpu.memory_space<vmem>>, %arg6: memref<2x256xf32, #tpu.memory_space<vmem>>, %arg7: memref<1x4x256xf32, #tpu.memory_space<vmem>>, %arg8: memref<4x512xf32, #tpu.memory_space<vmem>>, %arg9: memref<36x256xf32, #tpu.memory_space<vmem>>) attributes {dimension_semantics = [#tpu.dimension_semantics<parallel>], iteration_bounds = array<i64: 2>, scalar_prefetch = 0 : i64, scratch_operands = 2 : i64, tpu.core_type = #tpu.core_type<tc>, window_params = [{transform_indices = @transform_0, window_bounds = array<i64: 1, 4, 256>}, {pipeline_mode = #tpu.pipeline_mode<synchronous>, transform_indices = @transform_1, window_bounds = array<i64: 4, 36>}, {pipeline_mode = #tpu.pipeline_mode<synchronous>, transform_indices = @transform_2, window_bounds = array<i64: 4, 1>}, {pipeline_mode = #tpu.pipeline_mode<synchronous>, transform_indices = @transform_3, window_bounds = array<i64: 4, 36>}, {pipeline_mode = #tpu.pipeline_mode<synchronous>, transform_indices = @transform_4, window_bounds = array<i64: 4, 1>}, {pipeline_mode = #tpu.pipeline_mode<synchronous>, transform_indices = @transform_5, window_bounds = array<i64: 2, 256>}, {transform_indices = @transform_6, window_bounds = array<i64: 1, 4, 256>}]} {
    %c0 = arith.constant 0 : index
    %c0_0 = arith.constant 0 : index
    %0 = vector.load %arg6[%c0, %c0_0] : memref<2x256xf32, #tpu.memory_space<vmem>>, vector<1x256xf32>
    %c1 = arith.constant 1 : index
    %c0_1 = arith.constant 0 : index
    %1 = vector.load %arg6[%c1, %c0_1] : memref<2x256xf32, #tpu.memory_space<vmem>>, vector<1x256xf32>
    %cst = arith.constant 0.000000e+00 : f32
    %2 = vector.broadcast %cst : f32 to vector<4x512xf32>
    %c0_2 = arith.constant 0 : index
    %c0_3 = arith.constant 0 : index
    %3 = vector.load %arg8[%c0_2, %c0_3] : memref<4x512xf32, #tpu.memory_space<vmem>>, vector<4x512xf32>
    tpu.vector_store %arg8[%c0_2, %c0_3], %2 {strides = array<i32>} : memref<4x512xf32, #tpu.memory_space<vmem>>, vector<4x512xf32>,
    %c0_4 = arith.constant 0 : index
    %c0_5 = arith.constant 0 : index
    %c0_6 = arith.constant 0 : index
    %4 = vector.load %arg1[%c0_4, %c0_5, %c0_6] : memref<1x4x256xf32, #tpu.memory_space<vmem>>, vector<1x4x256xf32>
    %5 = vector.shape_cast %4 : vector<1x4x256xf32> to vector<4x256xf32>
    %c0_7 = arith.constant 0 : index
    %c128 = arith.constant 128 : index
    %6 = vector.load %arg8[%c0_7, %c128] : memref<4x512xf32, #tpu.memory_space<vmem>>, vector<4x256xf32>
    tpu.vector_store %arg8[%c0_7, %c128], %5 {strides = array<i32>} : memref<4x512xf32, #tpu.memory_space<vmem>>, vector<4x256xf32>,
    %c0_8 = arith.constant 0 : index
    %c111 = arith.constant 111 : index
    %7 = vector.load %arg8[%c0_8, %c111] : memref<4x512xf32, #tpu.memory_space<vmem>>, vector<4x256xf32>
    %8 = vector.broadcast %0 : vector<1x256xf32> to vector<4x256xf32>
    %9 = arith.mulf %7, %8 : vector<4x256xf32>
    %c0_9 = arith.constant 0 : index
    %c0_10 = arith.constant 0 : index
    %10 = vector.load %arg9[%c0_9, %c0_10] : memref<36x256xf32, #tpu.memory_space<vmem>>, vector<4x256xf32>
    tpu.vector_store %arg9[%c0_9, %c0_10], %9 {strides = array<i32>} : memref<36x256xf32, #tpu.memory_space<vmem>>, vector<4x256xf32>,
    %c0_11 = arith.constant 0 : index
    %c112 = arith.constant 112 : index
    %11 = vector.load %arg8[%c0_11, %c112] : memref<4x512xf32, #tpu.memory_space<vmem>>, vector<4x256xf32>
    %c4 = arith.constant 4 : index
    %c0_12 = arith.constant 0 : index
    %12 = vector.load %arg9[%c4, %c0_12] : memref<36x256xf32, #tpu.memory_space<vmem>>, vector<4x256xf32>
    tpu.vector_store %arg9[%c4, %c0_12], %11 {strides = array<i32>} : memref<36x256xf32, #tpu.memory_space<vmem>>, vector<4x256xf32>,
    %c0_13 = arith.constant 0 : index
    %c113 = arith.constant 113 : index
    %13 = vector.load %arg8[%c0_13, %c113] : memref<4x512xf32, #tpu.memory_space<vmem>>, vector<4x256xf32>
    %14 = vector.broadcast %1 : vector<1x256xf32> to vector<4x256xf32>
    %15 = arith.mulf %13, %14 : vector<4x256xf32>
    %c8 = arith.constant 8 : index
    %c0_14 = arith.constant 0 : index
    %16 = vector.load %arg9[%c8, %c0_14] : memref<36x256xf32, #tpu.memory_space<vmem>>, vector<4x256xf32>
    tpu.vector_store %arg9[%c8, %c0_14], %15 {strides = array<i32>} : memref<36x256xf32, #tpu.memory_space<vmem>>, vector<4x256xf32>,
    %c0_15 = arith.constant 0 : index
    %c127 = arith.constant 127 : index
    %17 = vector.load %arg8[%c0_15, %c127] : memref<4x512xf32, #tpu.memory_space<vmem>>, vector<4x256xf32>
    %18 = vector.broadcast %0 : vector<1x256xf32> to vector<4x256xf32>
    %19 = arith.mulf %17, %18 : vector<4x256xf32>
    %c12 = arith.constant 12 : index
    %c0_16 = arith.constant 0 : index
    %20 = vector.load %arg9[%c12, %c0_16] : memref<36x256xf32, #tpu.memory_space<vmem>>, vector<4x256xf32>
    tpu.vector_store %arg9[%c12, %c0_16], %19 {strides = array<i32>} : memref<36x256xf32, #tpu.memory_space<vmem>>, vector<4x256xf32>,
    %c0_17 = arith.constant 0 : index
    %c128_18 = arith.constant 128 : index
    %21 = vector.load %arg8[%c0_17, %c128_18] : memref<4x512xf32, #tpu.memory_space<vmem>>, vector<4x256xf32>
    %c16 = arith.constant 16 : index
    %c0_19 = arith.constant 0 : index
    %22 = vector.load %arg9[%c16, %c0_19] : memref<36x256xf32, #tpu.memory_space<vmem>>, vector<4x256xf32>
    tpu.vector_store %arg9[%c16, %c0_19], %21 {strides = array<i32>} : memref<36x256xf32, #tpu.memory_space<vmem>>, vector<4x256xf32>,
    %c0_20 = arith.constant 0 : index
    %c129 = arith.constant 129 : index
    %23 = vector.load %arg8[%c0_20, %c129] : memref<4x512xf32, #tpu.memory_space<vmem>>, vector<4x256xf32>
    %24 = vector.broadcast %1 : vector<1x256xf32> to vector<4x256xf32>
    %25 = arith.mulf %23, %24 : vector<4x256xf32>
    %c20 = arith.constant 20 : index
    %c0_21 = arith.constant 0 : index
    %26 = vector.load %arg9[%c20, %c0_21] : memref<36x256xf32, #tpu.memory_space<vmem>>, vector<4x256xf32>
    tpu.vector_store %arg9[%c20, %c0_21], %25 {strides = array<i32>} : memref<36x256xf32, #tpu.memory_space<vmem>>, vector<4x256xf32>,
    %c0_22 = arith.constant 0 : index
    %c143 = arith.constant 143 : index
    %27 = vector.load %arg8[%c0_22, %c143] : memref<4x512xf32, #tpu.memory_space<vmem>>, vector<4x256xf32>
    %28 = vector.broadcast %0 : vector<1x256xf32> to vector<4x256xf32>
    %29 = arith.mulf %27, %28 : vector<4x256xf32>
    %c24 = arith.constant 24 : index
    %c0_23 = arith.constant 0 : index
    %30 = vector.load %arg9[%c24, %c0_23] : memref<36x256xf32, #tpu.memory_space<vmem>>, vector<4x256xf32>
    tpu.vector_store %arg9[%c24, %c0_23], %29 {strides = array<i32>} : memref<36x256xf32, #tpu.memory_space<vmem>>, vector<4x256xf32>,
    %c0_24 = arith.constant 0 : index
    %c144 = arith.constant 144 : index
    %31 = vector.load %arg8[%c0_24, %c144] : memref<4x512xf32, #tpu.memory_space<vmem>>, vector<4x256xf32>
    %c28 = arith.constant 28 : index
    %c0_25 = arith.constant 0 : index
    %32 = vector.load %arg9[%c28, %c0_25] : memref<36x256xf32, #tpu.memory_space<vmem>>, vector<4x256xf32>
    tpu.vector_store %arg9[%c28, %c0_25], %31 {strides = array<i32>} : memref<36x256xf32, #tpu.memory_space<vmem>>, vector<4x256xf32>,
    %c0_26 = arith.constant 0 : index
    %c145 = arith.constant 145 : index
    %33 = vector.load %arg8[%c0_26, %c145] : memref<4x512xf32, #tpu.memory_space<vmem>>, vector<4x256xf32>
    %34 = vector.broadcast %1 : vector<1x256xf32> to vector<4x256xf32>
    %35 = arith.mulf %33, %34 : vector<4x256xf32>
    %c32 = arith.constant 32 : index
    %c0_27 = arith.constant 0 : index
    %36 = vector.load %arg9[%c32, %c0_27] : memref<36x256xf32, #tpu.memory_space<vmem>>, vector<4x256xf32>
    tpu.vector_store %arg9[%c32, %c0_27], %35 {strides = array<i32>} : memref<36x256xf32, #tpu.memory_space<vmem>>, vector<4x256xf32>,
    %c0_28 = arith.constant 0 : index
    %c0_29 = arith.constant 0 : index
    %37 = vector.load %arg2[%c0_28, %c0_29] : memref<4x36xf32, #tpu.memory_space<vmem>>, vector<4x36xf32>
    %c0_30 = arith.constant 0 : index
    %c0_31 = arith.constant 0 : index
    %38 = vector.load %arg9[%c0_30, %c0_31] : memref<36x256xf32, #tpu.memory_space<vmem>>, vector<36x256xf32>
    %cst_32 = arith.constant dense<0.000000e+00> : vector<4x256xf32>
    %39 = tpu.matmul %37, %38, %cst_32 {dimension_numbers = #tpu.dot_dimension_numbers<[1], [0], [0], [1], [0, 0, 1, 1], [], []>} : vector<4x36xf32>, vector<36x256xf32>, vector<4x256xf32> -> vector<4x256xf32>
    %c0_33 = arith.constant 0 : index
    %c0_34 = arith.constant 0 : index
    %40 = vector.load %arg3[%c0_33, %c0_34] : memref<4x1xf32, #tpu.memory_space<vmem>>, vector<4x1xf32>
    %41 = vector.broadcast %40 : vector<4x1xf32> to vector<4x256xf32>
    %42 = arith.addf %39, %41 : vector<4x256xf32>
    %cst_35 = arith.constant 0.000000e+00 : f32
    %43 = vector.broadcast %cst_35 : f32 to vector<4x256xf32>
    %44 = arith.maximumf %42, %43 : vector<4x256xf32>
    %c0_36 = arith.constant 0 : index
    %c128_37 = arith.constant 128 : index
    %45 = vector.load %arg8[%c0_36, %c128_37] : memref<4x512xf32, #tpu.memory_space<vmem>>, vector<4x256xf32>
    tpu.vector_store %arg8[%c0_36, %c128_37], %44 {strides = array<i32>} : memref<4x512xf32, #tpu.memory_space<vmem>>, vector<4x256xf32>,
    %c0_38 = arith.constant 0 : index
    %c111_39 = arith.constant 111 : index
    %46 = vector.load %arg8[%c0_38, %c111_39] : memref<4x512xf32, #tpu.memory_space<vmem>>, vector<4x256xf32>
    %47 = vector.broadcast %0 : vector<1x256xf32> to vector<4x256xf32>
    %48 = arith.mulf %46, %47 : vector<4x256xf32>
    %c0_40 = arith.constant 0 : index
    %c0_41 = arith.constant 0 : index
    %49 = vector.load %arg9[%c0_40, %c0_41] : memref<36x256xf32, #tpu.memory_space<vmem>>, vector<4x256xf32>
    tpu.vector_store %arg9[%c0_40, %c0_41], %48 {strides = array<i32>} : memref<36x256xf32, #tpu.memory_space<vmem>>, vector<4x256xf32>,
    %c0_42 = arith.constant 0 : index
    %c112_43 = arith.constant 112 : index
    %50 = vector.load %arg8[%c0_42, %c112_43] : memref<4x512xf32, #tpu.memory_space<vmem>>, vector<4x256xf32>
    %c4_44 = arith.constant 4 : index
    %c0_45 = arith.constant 0 : index
    %51 = vector.load %arg9[%c4_44, %c0_45] : memref<36x256xf32, #tpu.memory_space<vmem>>, vector<4x256xf32>
    tpu.vector_store %arg9[%c4_44, %c0_45], %50 {strides = array<i32>} : memref<36x256xf32, #tpu.memory_space<vmem>>, vector<4x256xf32>,
    %c0_46 = arith.constant 0 : index
    %c113_47 = arith.constant 113 : index
    %52 = vector.load %arg8[%c0_46, %c113_47] : memref<4x512xf32, #tpu.memory_space<vmem>>, vector<4x256xf32>
    %53 = vector.broadcast %1 : vector<1x256xf32> to vector<4x256xf32>
    %54 = arith.mulf %52, %53 : vector<4x256xf32>
    %c8_48 = arith.constant 8 : index
    %c0_49 = arith.constant 0 : index
    %55 = vector.load %arg9[%c8_48, %c0_49] : memref<36x256xf32, #tpu.memory_space<vmem>>, vector<4x256xf32>
    tpu.vector_store %arg9[%c8_48, %c0_49], %54 {strides = array<i32>} : memref<36x256xf32, #tpu.memory_space<vmem>>, vector<4x256xf32>,
    %c0_50 = arith.constant 0 : index
    %c127_51 = arith.constant 127 : index
    %56 = vector.load %arg8[%c0_50, %c127_51] : memref<4x512xf32, #tpu.memory_space<vmem>>, vector<4x256xf32>
    %57 = vector.broadcast %0 : vector<1x256xf32> to vector<4x256xf32>
    %58 = arith.mulf %56, %57 : vector<4x256xf32>
    %c12_52 = arith.constant 12 : index
    %c0_53 = arith.constant 0 : index
    %59 = vector.load %arg9[%c12_52, %c0_53] : memref<36x256xf32, #tpu.memory_space<vmem>>, vector<4x256xf32>
    tpu.vector_store %arg9[%c12_52, %c0_53], %58 {strides = array<i32>} : memref<36x256xf32, #tpu.memory_space<vmem>>, vector<4x256xf32>,
    %c0_54 = arith.constant 0 : index
    %c128_55 = arith.constant 128 : index
    %60 = vector.load %arg8[%c0_54, %c128_55] : memref<4x512xf32, #tpu.memory_space<vmem>>, vector<4x256xf32>
    %c16_56 = arith.constant 16 : index
    %c0_57 = arith.constant 0 : index
    %61 = vector.load %arg9[%c16_56, %c0_57] : memref<36x256xf32, #tpu.memory_space<vmem>>, vector<4x256xf32>
    tpu.vector_store %arg9[%c16_56, %c0_57], %60 {strides = array<i32>} : memref<36x256xf32, #tpu.memory_space<vmem>>, vector<4x256xf32>,
    %c0_58 = arith.constant 0 : index
    %c129_59 = arith.constant 129 : index
    %62 = vector.load %arg8[%c0_58, %c129_59] : memref<4x512xf32, #tpu.memory_space<vmem>>, vector<4x256xf32>
    %63 = vector.broadcast %1 : vector<1x256xf32> to vector<4x256xf32>
    %64 = arith.mulf %62, %63 : vector<4x256xf32>
    %c20_60 = arith.constant 20 : index
    %c0_61 = arith.constant 0 : index
    %65 = vector.load %arg9[%c20_60, %c0_61] : memref<36x256xf32, #tpu.memory_space<vmem>>, vector<4x256xf32>
    tpu.vector_store %arg9[%c20_60, %c0_61], %64 {strides = array<i32>} : memref<36x256xf32, #tpu.memory_space<vmem>>, vector<4x256xf32>,
    %c0_62 = arith.constant 0 : index
    %c143_63 = arith.constant 143 : index
    %66 = vector.load %arg8[%c0_62, %c143_63] : memref<4x512xf32, #tpu.memory_space<vmem>>, vector<4x256xf32>
    %67 = vector.broadcast %0 : vector<1x256xf32> to vector<4x256xf32>
    %68 = arith.mulf %66, %67 : vector<4x256xf32>
    %c24_64 = arith.constant 24 : index
    %c0_65 = arith.constant 0 : index
    %69 = vector.load %arg9[%c24_64, %c0_65] : memref<36x256xf32, #tpu.memory_space<vmem>>, vector<4x256xf32>
    tpu.vector_store %arg9[%c24_64, %c0_65], %68 {strides = array<i32>} : memref<36x256xf32, #tpu.memory_space<vmem>>, vector<4x256xf32>,
    %c0_66 = arith.constant 0 : index
    %c144_67 = arith.constant 144 : index
    %70 = vector.load %arg8[%c0_66, %c144_67] : memref<4x512xf32, #tpu.memory_space<vmem>>, vector<4x256xf32>
    %c28_68 = arith.constant 28 : index
    %c0_69 = arith.constant 0 : index
    %71 = vector.load %arg9[%c28_68, %c0_69] : memref<36x256xf32, #tpu.memory_space<vmem>>, vector<4x256xf32>
    tpu.vector_store %arg9[%c28_68, %c0_69], %70 {strides = array<i32>} : memref<36x256xf32, #tpu.memory_space<vmem>>, vector<4x256xf32>,
    %c0_70 = arith.constant 0 : index
    %c145_71 = arith.constant 145 : index
    %72 = vector.load %arg8[%c0_70, %c145_71] : memref<4x512xf32, #tpu.memory_space<vmem>>, vector<4x256xf32>
    %73 = vector.broadcast %1 : vector<1x256xf32> to vector<4x256xf32>
    %74 = arith.mulf %72, %73 : vector<4x256xf32>
    %c32_72 = arith.constant 32 : index
    %c0_73 = arith.constant 0 : index
    %75 = vector.load %arg9[%c32_72, %c0_73] : memref<36x256xf32, #tpu.memory_space<vmem>>, vector<4x256xf32>
    tpu.vector_store %arg9[%c32_72, %c0_73], %74 {strides = array<i32>} : memref<36x256xf32, #tpu.memory_space<vmem>>, vector<4x256xf32>,
    %c0_74 = arith.constant 0 : index
    %c0_75 = arith.constant 0 : index
    %76 = vector.load %arg4[%c0_74, %c0_75] : memref<4x36xf32, #tpu.memory_space<vmem>>, vector<4x36xf32>
    %c0_76 = arith.constant 0 : index
    %c0_77 = arith.constant 0 : index
    %77 = vector.load %arg9[%c0_76, %c0_77] : memref<36x256xf32, #tpu.memory_space<vmem>>, vector<36x256xf32>
    %cst_78 = arith.constant dense<0.000000e+00> : vector<4x256xf32>
    %78 = tpu.matmul %76, %77, %cst_78 {dimension_numbers = #tpu.dot_dimension_numbers<[1], [0], [0], [1], [0, 0, 1, 1], [], []>} : vector<4x36xf32>, vector<36x256xf32>, vector<4x256xf32> -> vector<4x256xf32>
    %c0_79 = arith.constant 0 : index
    %c0_80 = arith.constant 0 : index
    %79 = vector.load %arg5[%c0_79, %c0_80] : memref<4x1xf32, #tpu.memory_space<vmem>>, vector<4x1xf32>
    %80 = vector.broadcast %79 : vector<4x1xf32> to vector<4x256xf32>
    %81 = arith.addf %78, %80 : vector<4x256xf32>
    %cst_81 = arith.constant 1.000000e-01 : f32
    %82 = vector.broadcast %cst_81 : f32 to vector<4x256xf32>
    %83 = arith.mulf %81, %82 : vector<4x256xf32>
    %c0_82 = arith.constant 0 : index
    %c0_83 = arith.constant 0 : index
    %c0_84 = arith.constant 0 : index
    %84 = vector.load %arg7[%c0_82, %c0_83, %c0_84] : memref<1x4x256xf32, #tpu.memory_space<vmem>>, vector<1x4x256xf32>
    %85 = vector.shape_cast %84 : vector<1x4x256xf32> to vector<4x256xf32>
    %86 = vector.shape_cast %83 : vector<4x256xf32> to vector<1x4x256xf32>
    tpu.vector_store %arg7[%c0_82, %c0_83, %c0_84], %86 {strides = array<i32>} : memref<1x4x256xf32, #tpu.memory_space<vmem>>, vector<1x4x256xf32>,
    return
  }
  func.func @transform_0(%arg0: i32) -> (i32, i32, i32) {
    %c0_i32 = arith.constant 0 : i32
    %c0_i32_0 = arith.constant 0 : i32
    %c0_i32_1 = arith.constant 0 : i32
    return %arg0, %c0_i32, %c0_i32_0 : i32, i32, i32
  }
  func.func @transform_1(%arg0: i32) -> (i32, i32) {
    %c0_i32 = arith.constant 0 : i32
    %c0_i32_0 = arith.constant 0 : i32
    %c0_i32_1 = arith.constant 0 : i32
    return %c0_i32, %c0_i32_0 : i32, i32
  }
  func.func @transform_2(%arg0: i32) -> (i32, i32) {
    %c0_i32 = arith.constant 0 : i32
    %c0_i32_0 = arith.constant 0 : i32
    %c0_i32_1 = arith.constant 0 : i32
    return %c0_i32, %c0_i32_0 : i32, i32
  }
  func.func @transform_3(%arg0: i32) -> (i32, i32) {
    %c0_i32 = arith.constant 0 : i32
    %c0_i32_0 = arith.constant 0 : i32
    %c0_i32_1 = arith.constant 0 : i32
    return %c0_i32, %c0_i32_0 : i32, i32
  }
  func.func @transform_4(%arg0: i32) -> (i32, i32) {
    %c0_i32 = arith.constant 0 : i32
    %c0_i32_0 = arith.constant 0 : i32
    %c0_i32_1 = arith.constant 0 : i32
    return %c0_i32, %c0_i32_0 : i32, i32
  }
  func.func @transform_5(%arg0: i32) -> (i32, i32) {
    %c0_i32 = arith.constant 0 : i32
    %c0_i32_0 = arith.constant 0 : i32
    %c0_i32_1 = arith.constant 0 : i32
    return %c0_i32, %c0_i32_0 : i32, i32
  }
  func.func @transform_6(%arg0: i32) -> (i32, i32, i32) {
    %c0_i32 = arith.constant 0 : i32
    %c0_i32_0 = arith.constant 0 : i32
    %c0_i32_1 = arith.constant 0 : i32
    return %arg0, %c0_i32, %c0_i32_0 : i32, i32, i32
  }
}

</mosaic_0001>

<bundles_post_ra>
// kernel: tpu_custom_call.1
= control target key start
LH: loop header
LB: loop body
LE: loop exit
PB: predicated region body
PF: predicated region fallthrough
CT: control target
= control target key end

     0   :  { %11 = vsyncpa [#allocation5], 0  ;;  %s1547_s0 = inlined_call_operand.hbm [shape: f32[2,4,256], index: 0, kind: input, shape index: {}]   ;;  %s1548_s1 = inlined_call_operand.vmem [shape: f32[4,36], index: 1, kind: input, shape index: {}]   ;;  %s1549_s2 = inlined_call_operand.vmem [shape: f32[4,1], index: 2, kind: input, shape index: {}]   ;;  %s1550_s3 = inlined_call_operand.vmem [shape: f32[4,36], index: 3, kind: input, shape index: {}]   ;;  %s1551_s4 = inlined_call_operand.vmem [shape: f32[4,1], index: 4, kind: input, shape index: {}]   ;;  %s1552_s5 = inlined_call_operand.vmem [shape: f32[2,256], index: 5, kind: input, shape index: {}]   ;;  %s1553_s6 = inlined_call_operand.hbm [shape: f32[2,4,256], index: 6, kind: output, shape index: {}]  }
   0x1   :  { %13 = vsyncpa [#allocation5 + $0x1], 0 }
   0x2   :  { %14 = vsyncpa [#allocation6], 0 }
   0x3   :  { %16 = vsyncpa [#allocation6 + $0x1], 0  ;;  %s1201_s21 = smov 0   ;;  %s1203_s22 = smov 0  }
   0x4   :  { %s1205_s23 = smov 0   ;;  %s1207_s24 = smov 0  }
   0x5 LB: > { %s1222_s25 = sadd.s32 4294967295, %s1152_s24   ;;  %s950_s26 = sadd.s32 4294967294, %s1152_s24   ;;  %s1152_s24 = sphi %s1207_s24, %s1568_s24   ;;  %s1148_s23 = sphi %s1205_s23, %s1567_s23   ;;  %s1144_s22 = sphi %s1203_s22, %s1566_s22   ;;  %s1140_s21 = sphi %s1201_s21, %s1565_s21  }
   0x6   : > { %s1226_s27 = sadd.s32 1, %s1152_s24   ;;  %s29_s28 = sadd.s32 1, %s1148_s23 }
   0x7   : > { %s26_s29 = ssub.s32 %s1152_s24, %s1226_s27  ;;  %p36_p0 = scmp.ne.s32.totalorder %s1148_s23, %s1144_s22 }
   0x8   : > { %p27_p1 = scmp.eq.s32.totalorder %s26_s29, 0  ;;  %p37_p2 = scmp.eq.s32.totalorder %s1152_s24, 0 }
   0x9   : > { %p42_p3 = scmp.ne.s32.totalorder %s1144_s22, %s1140_s21  ;;  %p43_p4 = scmp.eq.s32.totalorder %s1222_s25, 0 }
   0xa   : > { %s1238_s30 = scalar_select %p27_p1, %s1148_s23, %s29_s28  }
   0xb   : > { %p1240_p5 = por %p37_p2, %p36_p0  ;;  %p1244_p6 = por %p43_p4, %p42_p3 }
   0xc   : > { %p171_p7 = scmp.eq.s32.totalorder %s1222_s25, 1  ;;  %p177_p8 = scmp.eq.s32.totalorder %s950_s26, 1 }
   0xd   : > { %p1001_p10 = scmp.lt.s32.totalorder %s1152_s24, 2  ;;  %s212_s11 = sand.u32 1, %s1148_s23  }
   0xe   : > { %p1251_p11 = por %p171_p7, %p36_p0  ;;  %p1255_p12 = por %p177_p8, %p42_p3 }
   0xf   : > { %s971_s12 = sshll.u32 %s1152_s24, 7  ;;  %s953_s13 = sshll.u32 %s212_s11, 3 }
  0x10   : > { %s1557_s9 = scalar_select %p1251_p11, 1, 0 }
  0x11   : > { %s1558_s10 = scalar_select %p1255_p12, 1, 0 }
  0x12   : > { %s1264_s16 = scalar_lea.hbm %s1547_s0, %s971_s12  ;;  %s216_s17 = scalar_lea.vmem [#allocation4], %s953_s13 }
  0x13   : > { %s224_s18 = sshll.u32 %s216_s17, 4  ;;  %p1268_p13 = pnand %p1001_p10, %p1240_p5  ;;  %s1272_s18 = int_to_ptr.vmem [resolvable:$true] %s224_s18 }
  0x14   : > { %s213_s20 = scalar_lea.sflag [#allocation5], %s212_s11  ;;  %s1056_s26 = scalar_lea.hbm %s1264_s16, 128 }
  0x15   : > { %p1057_p2 = scmp.ne.s32.totalorder %s1264_s16, %s1056_s26  ;;  %p1058_p3 = pneg %p1268_p13 }
  0x16   : > { %s1061_s7 = scalar_lea.hbm %s1547_s0, 256  ;;  %p1062_p5 = scmp.lt.u32.totalorder %s1264_s16, %s1547_s0 }
  0x17   : > { %p1059_p4 = pnand %p1058_p3, %p1057_p2  ;;  %p1063_p8 = scmp.lt.u32.totalorder %s1061_s7, %s1056_s26 }
  0x18   : > { %p1065_p9 = scmp.lt.u32.totalorder %s1056_s26, %s1264_s16 }
  0x19   : > { %p1060_p7 = pneg %p1059_p4  ;;  %p1064_p10 = por %p1063_p8, %p1062_p5 }
  0x1b   : > { %p1066_p0 = por %p1065_p9, %p1064_p10 }
  0x1d   : > { %p1067_p1 = pnand %p1066_p0, %p1060_p7 }
  0x1f   : > { %1070 = shalt.err (!%p1067_p1)
}
  0x20   : > { %s1071_s11 = scalar_lea.vmem %s1272_s18, 128  ;;  %s1154_s14 = smov [#allocation4]  }
  0x21   : > { %p1072_p2 = scmp.ne.s32.totalorder %s1272_s18, %s1071_s11  ;;  %s1076_s15 = sshll.u32 %s1154_s14, 4  ;;  %s1077_s15 = int_to_ptr.vmem [resolvable:$false] %s1076_s15 }
  0x22   : > { %s1078_s17 = scalar_lea.vmem %s1077_s15, 256  ;;  %p1079_p11 = scmp.lt.s32.totalorder %s1272_s18, %s1077_s15 }
  0x23   : > { %p1074_p4 = pnand %p1072_p2, %p1058_p3  ;;  %p1080_p5 = scmp.lt.s32.totalorder %s1078_s17, %s1071_s11 }
  0x25   : > { %p1075_p12 = pneg %p1074_p4  ;;  %p1081_p8 = por %p1080_p5, %p1079_p11 }
  0x27   : > { %p1082_p9 = pnand %p1081_p8, %p1075_p12 }
  0x29   : > { %1085 = shalt.err (!%p1082_p9)
}
  0x2a   : > { %996 = dma.hbm_to_vmem [thread:$0]  (!%p1268_p13), %s1264_s16, 128, %s1272_s18, %s213_s20  }
  0x2b   : > { %p1560_p0 = scmp.lt.s32.totalorder %s1152_s24, 3  ;;  %p1561_p1 = scmp.ge.s32.totalorder %s1152_s24, 1 }
  0x2d   : > { %p230_p3 = pnand %p1561_p1, %p1560_p0 }
  0x2e   : > { %s1306_s26 = sand.u32 (!%p230_p3), 1, %s1144_s22  }
  0x2f   : > { %233 = sbr.rel (%p230_p3) target bundleno = 975 (0x3cf), region = 44  ;;  %s957_s28 = sshll.u32 (!%p230_p3), %s1306_s26, 3 }
  0x30   : > { %s236_s29 = scalar_lea.sflag (!%p230_p3), [#allocation5], %s1306_s26  ;;  %s239_s19 = scalar_lea.vmem (!%p230_p3), [#allocation4], %s957_s28 }
  0x36   : > { %1131 = dma.done.wait (%p1244_p6), %s236_s29, 128  }
  0x37   : > { %1133 = vsyncadd (%p1244_p6), %s236_s29, 4294967168  ;;  %v278_v0 = vlaneseq  ;;  %v1155_v1 = vmov 0.0   ;;  %v268_v5 = vld [vmem:[%s1552_s5] ss:$2 sm:$0x3]  ;;  %s1156_s8 = smov 127  }
  0x38   : > { %271 = vst [vmem:[#allocation2] sm:$0xff] %v1155_v1  ;;  %272 = vst [vmem:[#allocation2 + $0x8] sm:$0xff] %v1155_v1  ;;  %589 = vmatprep.mubr.f32.mxu0 %v1155_v1  ;;  %851 = vmatprep.mubr.f32.mxu1 %v1155_v1  ;;  %v959_v6 = vld [vmem:[%s1552_s5 + $0x1] ss:$2 sm:$0x3]  ;;  %s1157_s12 = smov 111  }
  0x39   : > { %v279_v2 = vshrl.u32 %v278_v0, 7  ;;  %v1322_v11 = vld [vmem:[%s239_s19] sm:$0xff]  ;;  %s1158_s13 = smov 113   ;;  %s1159_s11 = smov 15   ;;  %vm373_vm0 = vcmask 1039360   ;;  %vm290_vm1 = vcmask 908288  }
  0x3a   : > { %274 = vst [vmem:[#allocation2 + $0x4] sm:$0xff] %v1322_v11  ;;  %400 = vst [vmem:[#allocation3 + $0x20] sm:$0xf] %v1322_v11  ;;  %s1160_s14 = smov 1   ;;  %s1161_s15 = smov 17   ;;  %vm346_vm2 = vcmask 924672   ;;  %v398_v38 = vcombine.high %v1322_v11, %v1322_v11 }
  0x3b   : > { %v280_v3 = vsub.s32 0, %v279_v2  ;;  %v284_v4 = vsub.s32 1, %v279_v2  ;;  %s1162_s17 = smov 16   ;;  %s1163_s29 = smov 112   ;;  %vm389_vm3 = vcmask 7168   ;;  %vm324_vm4 = vcmask 130048  }
  0x3c   : > { %401 = vst [vmem:[#allocation3 + $0x28] sm:$0xf] %v398_v38  ;;  %vm361_vm5 = vcmask 121856   ;;  %vm465_vm6 = vcmask 916480   ;;  %vm305_vm7 = vcmask 138240   ;;  %vm518_vm8 = vcmask 1043456  }
  0x3d   : > { %v281_v7 = vrot.slane %v268_v5, %v280_v3  ;;  %v285_v8 = vrot.slane %v268_v5, %v284_v4  ;;  %v337_v9 = vrot.slane %v959_v6, %v280_v3  ;;  %v341_v10 = vrot.slane %v959_v6, %v284_v4  ;;  %s866_s16 = scalar_lea.sflag [#allocation6], %s1306_s26  ;;  %p1562_p11 = scmp.ne.s32.totalorder %s1557_s9, 0 }
  0x3e   : > { %v457_v6 = vcombine.low %v1322_v11, %v1322_v11  ;;  %vm514_vm9 = vcmask 293888  }
  0x3f   : > { %v286_v12 = vcombine.low %v281_v7, %v285_v8  ;;  %v342_v13 = vcombine.low %v337_v9, %v341_v10  ;;  %v1048_v17 = vld [vmem:[#allocation2 + $0xc] ss:$0 sps:$4 sm:$0xff]  }
  0x40   : > { %v429_v32 = vld [vmem:[#allocation2 + $0xc] sm:$0xf] }
  0x41   : > { %370 = vrot.lane.b32.xlu1 %v286_v12, %s1156_s8  ;;  %287 = vrot.lane.b32.xlu0 %v286_v12, %s1157_s12  ;;  %v1046_v14 = vld [vmem:[#allocation2 + $0x8] ss:$0 sps:$4 sm:$0xff]   ;;  %v312_v15 = vld [vmem:[#allocation2] sm:$0xff]  ;;  %v403_v44 = vld [vmem:[#allocation2 + $0xc] sm:$0xf] }
  0x42   : > { %v316_v16 = vcombine.low %v312_v15, %v312_v15  ;;  %v276_v20 = vld [vmem:[#allocation2 + $0x8] sm:$0xf]  ;;  %v686_v5 = vld [vmem:[#allocation2 + $0xc] sm:$0xf] }
  0x43   : > { %v332_v28 = vld [vmem:[#allocation2 + $0x8] sm:$0xf]  ;;  %v473_v8 = vld [vmem:[#allocation2 + $0xc] sm:$0xf] }
  0x44   : > { %v369_v36 = vld [vmem:[#allocation2 + $0x8] sm:$0xf] }
  0x45   : > { %343 = vrot.lane.b32.xlu0 %v342_v13, %s1158_s13  ;;  %430 = vrot.lane.b32.xlu1 %v286_v12, %s1159_s11  ;;  %v706_v12 = vld [vmem:[#allocation2 + $0xc] sm:$0xf] }
  0x49   : > { %404 = vrot.lane.b32.xlu0 %v342_v13, %s1160_s14  ;;  %474 = vrot.lane.b32.xlu1 %v342_v13, %s1161_s15 }
  0x4d   : > { %322 = vrot.lane.b32.xlu1 %v1046_v14, %s1162_s17  ;;  %320 = vrot.lane.b32.xlu0 %v312_v15, %s1162_s17  ;;  %v1164_v14 = vmov 0  }
  0x4e   : > { %1045 = vset.pattern.permute.xlu0 %v1164_v14 }
  0x51   : > { %318 = vrot.lane.b32.xlu1 %v316_v16, %s1162_s17  ;;  %461 = vrot.lane.b32.xlu0 %v1322_v11, %s1163_s29 }
  0x55   : > { %463 = vrot.lane.b32.xlu1 %v1048_v17, %s1163_s29 }
  0xb3   : > { %v371_v18 = vpop.permute.xlu1 %370  ;;  %v288_v19 = vpop.permute.xlu0 %287 }
  0xb4   : > { %v1338_v21 = vrot.slane %v371_v18, 4  ;;  %v1340_v22 = vrot.slane %v288_v19, 4 }
  0xb6   : > { %v1344_v23 = vsel %vm373_vm0, %v1338_v21, %v371_v18  ;;  %v295_v24 = vmul.f32 %v1340_v22, %v276_v20  ;;  %v1350_v29 = vsel %vm290_vm1, %v1340_v22, %v288_v19  ;;  %v378_v42 = vmul.f32 %v1338_v21, %v369_v36 }
  0xb7   : > { %v377_v25 = vmul.f32 %v1344_v23, %v312_v15  ;;  %v344_v26 = vpop.permute.xlu0 %343  ;;  %v431_v27 = vpop.permute.xlu1 %430  ;;  %v294_v34 = vmul.f32 %v312_v15, %v1350_v29 }
  0xb8   : > { %v1352_v30 = vrot.slane %v344_v26, 4  ;;  %303 = vrot.lane.b32.xlu1 %v295_v24, %s1161_s15  ;;  %v1355_v31 = vrot.slane %v431_v27, 4  ;;  %v382_v49 = vcombine.low %v378_v42, %v378_v42 }
  0xb9   : > { %385 = vrot.lane.b32.xlu0 %v377_v25, %s1160_s14  ;;  %v298_v57 = vcombine.high %v294_v34, %v294_v34  ;;  %v381_v62 = vcombine.low %v377_v25, %v377_v25 }
  0xba   : > { %v351_v33 = vmul.f32 %v1352_v30, %v332_v28  ;;  %v1364_v39 = vsel %vm346_vm2, %v1352_v30, %v344_v26  ;;  %v437_v41 = vmul.f32 %v1355_v31, %v429_v32  ;;  %v1388_v59 = vsel %vm361_vm5, %v1355_v31, %v431_v27 }
  0xbb   : > { %v405_v35 = vpop.permute.xlu0 %404  ;;  %v475_v37 = vpop.permute.xlu1 %474  ;;  %v350_v43 = vmul.f32 %v1364_v39, %v312_v15  ;;  %v436_v63 = vmul.f32 %v1388_v59, %v1322_v11  ;;  %v708_v13 = vmul.f32 %v706_v12, %v1355_v31 }
  0xbc   : > { %359 = vrot.lane.b32.xlu1 %v351_v33, %s1159_s11  ;;  %v406_v40 = vrot.slane %v405_v35, 4  ;;  %v1382_v54 = vrot.slane %v475_v37, 4 }
  0xbd   : > { %299 = vrot.lane.b32.xlu0 %v294_v34, %s1161_s15  ;;  %v354_v0 = vcombine.high %v350_v43, %v350_v43  ;;  %v440_v2 = vcombine.high %v436_v63, %v436_v63 }
  0xbe   : > { %v1372_v47 = vsel %vm389_vm3, %v406_v40, %v405_v35  ;;  %v411_v50 = vmul.f32 %v406_v40, %v403_v44  ;;  %v1396_v61 = vsel %vm305_vm7, %v1382_v54, %v475_v37  ;;  %v688_v7 = vmul.f32 %v686_v5, %v406_v40 }
  0xbf   : > { %v323_v45 = vpop.permute.xlu1 %322  ;;  %v321_v46 = vpop.permute.xlu0 %320  ;;  %v410_v51 = vmul.f32 %v1372_v47, %v1322_v11  ;;  %v480_v1 = vmul.f32 %v1396_v61, %v1322_v11  ;;  %v481_v10 = vmul.f32 %v1382_v54, %v473_v8  ;;  %v508_v11 = vld [vmem:[%s1549_s2] sm:$0xf]  ;;  %v1051_v8 = vld [vmem:[#allocation2 + $0xc] ss:$0 sps:$4 sm:$0xff]  }
  0xc0   : > { %445 = vrot.lane.b32.xlu1 %v437_v41, %s1158_s13  ;;  %v326_v48 = vsel %vm324_vm4, %v321_v46, %v323_v45  ;;  %v415_v56 = vcombine.low %v411_v50, %v411_v50  ;;  %v692_v9 = vcombine.low %v688_v7, %v688_v7 }
  0xc1   : > { %355 = vrot.lane.b32.xlu0 %v350_v43, %s1159_s11  ;;  %330 = vst [vmem:[#allocation3 + $0x8] sm:$0xf0] %v326_v48  ;;  %v484_v3 = vcombine.high %v480_v1, %v480_v1  ;;  %v414_v4 = vcombine.low %v410_v51, %v410_v51 }
  0xc3   : > { %v319_v52 = vpop.permute.xlu1 %318  ;;  %v1384_v55 = vpop.permute.xlu0 %461 }
  0xc4   : > { %387 = vrot.lane.b32.xlu1 %v382_v49, %s1160_s14  ;;  %v325_v53 = vsel %vm324_vm4, %v319_v52, %v321_v46 }
  0xc5   : > { %418 = vrot.lane.b32.xlu0 %v410_v51, %s1156_s8  ;;  %329 = vst [vmem:[#allocation3] sm:$0xf0] %v325_v53 }
  0xc7   : > { %v464_v58 = vpop.permute.xlu1 %463 }
  0xc8   : > { %420 = vrot.lane.b32.xlu1 %v415_v56, %s1156_s8  ;;  %v467_v60 = vsel %vm465_vm6, %v1384_v55, %v464_v58 }
  0xc9   : > { %301 = vrot.lane.b32.xlu0 %v298_v57, %s1161_s15  ;;  %471 = vst [vmem:[#allocation3 + $0x38] sm:$0xf0] %v467_v60 }
  0xcc   : > { %383 = vrot.lane.b32.xlu1 %v381_v62, %s1160_s14 }
  0xcd   : > { %357 = vrot.lane.b32.xlu0 %v354_v0, %s1159_s11 }
  0xd0   : > { %441 = vrot.lane.b32.xlu1 %v436_v63, %s1158_s13 }
  0xd1   : > { %443 = vrot.lane.b32.xlu0 %v440_v2, %s1158_s13 }
  0xd4   : > { %487 = vrot.lane.b32.xlu1 %v484_v3, %s1157_s12 }
  0xd5   : > { %416 = vrot.lane.b32.xlu0 %v414_v4, %s1156_s8 }
  0xd8   : > { %485 = vrot.lane.b32.xlu1 %v480_v1, %s1157_s12 }
  0xd9   : > { %459 = vrot.lane.b32.xlu0 %v457_v6, %s1163_s29 }
  0xdc   : > { %697 = vrot.lane.b32.xlu1 %v692_v9, %s1156_s8 }
  0xdd   : > { %489 = vrot.lane.b32.xlu0 %v481_v10, %s1157_s12 }
  0xe0   : > { %716 = vrot.lane.b32.xlu1 %v708_v13, %s1158_s13 }
  0xe1   : > { %511 = vperm.xlu0 %1045, %v508_v11  }
  0xe4   : > { %734 = vrot.lane.b32.xlu1 %v1051_v8, %s1163_s29 }
 0x12a   : > { %v304_v15 = vpop.permute.xlu1 %303 }
 0x12b   : > { %v386_v16 = vpop.permute.xlu0 %385 }
 0x12e   : > { %v360_v17 = vpop.permute.xlu1 %359 }
 0x12f   : > { %v300_v18 = vpop.permute.xlu0 %299 }
 0x132   : > { %v446_v19 = vpop.permute.xlu1 %445 }
 0x133   : > { %v356_v20 = vpop.permute.xlu0 %355 }
 0x136   : > { %v388_v24 = vpop.permute.xlu1 %387 }
 0x137   : > { %v391_v25 = vsel %vm389_vm3, %v386_v16, %v388_v24  ;;  %v419_v26 = vpop.permute.xlu0 %418 }
 0x138   : > { %395 = vst [vmem:[#allocation3 + $0x18] sm:$0xf0] %v391_v25 }
 0x13a   : > { %v421_v27 = vpop.permute.xlu1 %420 }
 0x13b   : > { %v423_v28 = vsel %vm373_vm0, %v419_v26, %v421_v27  ;;  %v302_v31 = vpop.permute.xlu0 %301 }
 0x13c   : > { %427 = vst [vmem:[#allocation3 + $0x28] sm:$0xf0] %v423_v28  ;;  %v306_v32 = vsel %vm305_vm7, %v300_v18, %v302_v31  ;;  %v307_v33 = vsel %vm305_vm7, %v302_v31, %v304_v15 }
 0x13d   : > { %310 = vst [vmem:[#allocation3] sm:$0xf] %v306_v32  ;;  %311 = vst [vmem:[#allocation3 + $0x8] sm:$0xf] %v307_v33 }
 0x13e   : > { %v384_v34 = vpop.permute.xlu1 %383 }
 0x13f   : > { %v390_v35 = vsel %vm389_vm3, %v384_v34, %v386_v16  ;;  %v358_v36 = vpop.permute.xlu0 %357 }
 0x140   : > { %394 = vst [vmem:[#allocation3 + $0x10] sm:$0xf0] %v390_v35  ;;  %v362_v37 = vsel %vm361_vm5, %v356_v20, %v358_v36  ;;  %v363_v38 = vsel %vm361_vm5, %v358_v36, %v360_v17 }
 0x141   : > { %366 = vst [vmem:[#allocation3 + $0x10] sm:$0xf] %v362_v37  ;;  %367 = vst [vmem:[#allocation3 + $0x18] sm:$0xf] %v363_v38 }
 0x142   : > { %v442_v40 = vpop.permute.xlu1 %441 }
 0x143   : > { %v444_v41 = vpop.permute.xlu0 %443  ;;  %v503_v62 = vld [vmem:[#allocation3 + $0x28] sm:$0xff] }
 0x144   : > { %v447_v42 = vsel %vm346_vm2, %v442_v40, %v444_v41  ;;  %v448_v43 = vsel %vm346_vm2, %v444_v41, %v446_v19  ;;  %v499_v46 = vld [vmem:[#allocation3 + $0x8] sm:$0xff]  ;;  %v498_v50 = vld [vmem:[#allocation3] sm:$0xff] }
 0x145   : > { %451 = vst [vmem:[#allocation3 + $0x30] sm:$0xf] %v447_v42  ;;  %452 = vst [vmem:[#allocation3 + $0x38] sm:$0xf] %v448_v43 }
 0x146   : > { %v488_v44 = vpop.permute.xlu1 %487 }
 0x147   : > { %v417_v45 = vpop.permute.xlu0 %416 }
 0x148   : > { %v422_v48 = vsel %vm373_vm0, %v417_v45, %v419_v26  ;;  %v501_v49 = vld [vmem:[#allocation3 + $0x18] sm:$0xff]  ;;  %v500_v51 = vld [vmem:[#allocation3 + $0x10] sm:$0xff] }
 0x149   : > { %426 = vst [vmem:[#allocation3 + $0x20] sm:$0xf0] %v422_v48  ;;  %v973_v52 = vpack.c.bf16 %v501_v49, %v499_v46  ;;  %v975_v53 = vpack.c.bf16 %v500_v51, %v498_v50 }
 0x14a   : > { %v486_v56 = vpop.permute.xlu1 %485 }
 0x14b   : > { %v491_v57 = vsel %vm290_vm1, %v486_v56, %v488_v44  ;;  %974 = vmatprep.subr.bf16.mxu0 %v973_v52  ;;  %v460_v58 = vpop.permute.xlu0 %459 }
 0x14c   : > { %495 = vst [vmem:[#allocation3 + $0x40] sm:$0xf] %v491_v57  ;;  %v466_v60 = vsel %vm465_vm6, %v460_v58, %v1384_v55  ;;  %976 = vmatpush1.bf16.msra.mxu0 %v975_v53  ;;  %v505_v63 = vld [vmem:[#allocation3 + $0x38] sm:$0xff]  ;;  %v497_v55 = vld [vmem:[%s1548_s1] sm:$0xf] }
 0x14d   : > { %470 = vst [vmem:[#allocation3 + $0x30] sm:$0xf0] %v466_v60  ;;  %v977_v0 = vpack.c.bf16 %v505_v63, %v503_v62 }
 0x14e   : > { %v698_v41 = vpop.permute.xlu1 %697 }
 0x14f   : > { %978 = vmatprep.subr.bf16.mxu0 %v977_v0  ;;  %v490_v1 = vpop.permute.xlu0 %489 }
 0x150   : > { %v492_v2 = vsel %vm290_vm1, %v488_v44, %v490_v1  ;;  %v502_v3 = vld [vmem:[#allocation3 + $0x20] sm:$0xff] }
 0x151   : > { %496 = vst [vmem:[#allocation3 + $0x48] sm:$0xf] %v492_v2 }
 0x152   : > { %v717_v42 = vpop.permute.xlu1 %716 }
 0x153   : > { %v506_v7 = vld [vmem:[#allocation3 + $0x40] sm:$0xf] }
 0x154   : > { %v504_v4 = vld [vmem:[#allocation3 + $0x30] sm:$0xff] }
 0x155   : > { %v979_v5 = vpack.c.bf16 %v504_v4, %v502_v3 }
 0x156   : > { %v735_v43 = vpop.permute.xlu1 %734 }
 0x157   : > { %980 = vmatpush1.bf16.msra.mxu0 %v979_v5 }
 0x158   : > { %v507_v6 = vld [vmem:[#allocation3 + $0x48] sm:$0xf] }
 0x159   : > { %960 = vmatprep.subr.msk.mxu0 %vm518_vm8, %v507_v6 }
 0x15b   : > { %961 = vmatpush1.msk.msra.mxu0 %vm518_vm8, %v506_v7 }
 0x15c   : > { %962 = vmatmul.mubr.msk.f32.vlgmr.msra.gmra.mrb[0].mxu0 %vm514_vm9, %v497_v55 }
 0x160   : > { %v512_v9 = vpop.permute.xlu0 %511 }
 0x22f   : > { %v591_v10 = vpop.f32.mrb[0].mxu0 }
 0x230   : > { %v592_v12 = vadd.f32 %v591_v10, %v512_v9  ;;  %v593_v13 = vpop.f32.mrb[1].mxu0 }
 0x231   : > { %v594_v14 = vadd.f32 %v593_v13, %v512_v9 }
 0x232   : > { %v596_v11 = vmax.f32 %v592_v12, 0.0 }
 0x233   : > { %v597_v15 = vmax.f32 %v594_v14, 0.0 }
 0x234   : > { %v1055_v38 = vcombine.low %v596_v11, %v596_v11 }
 0x235   : > { %v600_v16 = vcombine.low %v596_v11, %v597_v15  ;;  %v1054_v17 = vcombine.low %v597_v15, %v597_v15 }
 0x237   : > { %602 = vst [vmem:[#allocation2 + $0x4] sm:$0xff] %v600_v16  ;;  %683 = vst [vmem:[#allocation3 + $0x20] sm:$0xf] %v600_v16  ;;  %v707_v35 = vmul.f32 %v600_v16, %v1388_v59  ;;  %v743_v59 = vld [vmem:[#allocation2 + $0xc] sm:$0xf] }
 0x238   : > { %684 = vst [vmem:[#allocation3 + $0x28] sm:$0xf] %v1054_v17  ;;  %v745_v40 = vmul.f32 %v743_v59, %v1382_v54 }
 0x239   : > { %v711_v36 = vcombine.high %v707_v35, %v707_v35 }
 0x23e   : > { %v622_v18 = vld [vmem:[#allocation2] sm:$0xff]  ;;  %v604_v19 = vld [vmem:[#allocation2 + $0x8] sm:$0xf] }
 0x23f   : > { %630 = vrot.lane.b32.xlu0 %v622_v18, %s1162_s17  ;;  %v606_v20 = vmul.f32 %v604_v19, %v1340_v22  ;;  %v1053_v24 = vld [vmem:[#allocation2 + $0x8] ss:$0 sps:$4 sm:$0xff]   ;;  %v661_v26 = vmul.f32 %v622_v18, %v1344_v23  ;;  %v605_v28 = vmul.f32 %v622_v18, %v1350_v29  ;;  %v626_v31 = vcombine.low %v622_v18, %v622_v18 }
 0x240   : > { %v641_v25 = vld [vmem:[#allocation2 + $0x8] sm:$0xf]  ;;  %v642_v32 = vmul.f32 %v622_v18, %v1364_v39 }
 0x241   : > { %614 = vrot.lane.b32.xlu1 %v606_v20, %s1161_s15  ;;  %v643_v27 = vmul.f32 %v641_v25, %v1352_v30  ;;  %v660_v22 = vld [vmem:[#allocation2 + $0x8] sm:$0xf]  ;;  %v609_v33 = vcombine.high %v605_v28, %v605_v28  ;;  %v687_v30 = vmul.f32 %v600_v16, %v1372_v47  ;;  %v665_v39 = vcombine.low %v661_v26, %v661_v26 }
 0x242   : > { %v662_v23 = vmul.f32 %v660_v22, %v1338_v21  ;;  %v646_v34 = vcombine.high %v642_v32, %v642_v32  ;;  %v744_v21 = vmul.f32 %v600_v16, %v1396_v61  ;;  %v772_v61 = vld [vmem:[%s1551_s4] sm:$0xf] }
 0x243   : > { %732 = vrot.lane.b32.xlu0 %v600_v16, %s1163_s29  ;;  %v691_v47 = vcombine.low %v687_v30, %v687_v30 }
 0x244   : > { %v666_v29 = vcombine.low %v662_v23, %v662_v23  ;;  %v748_v37 = vcombine.high %v744_v21, %v744_v21 }
 0x245   : > { %632 = vrot.lane.b32.xlu1 %v1053_v24, %s1162_s17 }
 0x247   : > { %669 = vrot.lane.b32.xlu0 %v661_v26, %s1160_s14 }
 0x249   : > { %651 = vrot.lane.b32.xlu1 %v643_v27, %s1159_s11 }
 0x24b   : > { %610 = vrot.lane.b32.xlu0 %v605_v28, %s1161_s15 }
 0x24d   : > { %628 = vrot.lane.b32.xlu1 %v626_v31, %s1162_s17 }
 0x24f   : > { %647 = vrot.lane.b32.xlu0 %v642_v32, %s1159_s11 }
 0x251   : > { %612 = vrot.lane.b32.xlu1 %v609_v33, %s1161_s15 }
 0x253   : > { %695 = vrot.lane.b32.xlu0 %v687_v30, %s1156_s8 }
 0x255   : > { %671 = vrot.lane.b32.xlu1 %v666_v29, %s1160_s14 }
 0x257   : > { %649 = vrot.lane.b32.xlu0 %v646_v34, %s1159_s11  ;;  %v761_v34 = vld [vmem:[%s1550_s3] sm:$0xf] }
 0x259   : > { %667 = vrot.lane.b32.xlu1 %v665_v39, %s1160_s14  ;;  %s267_s14 = scalar_lea.vmem [#allocation7], %s957_s28 }
 0x25a   : > { %s880_s15 = sshll.u32 %s267_s14, 4  ;;  %s1505_s15 = int_to_ptr.vmem [resolvable:$true] %s880_s15 }
 0x25b   : > { %714 = vrot.lane.b32.xlu0 %v711_v36, %s1158_s13  ;;  %s1086_s18 = scalar_lea.vmem %s1505_s15, 128 }
 0x25c   : > { %p1087_p6 = scmp.ne.s32.totalorder %s1505_s15, %s1086_s18 }
 0x25d   : > { %712 = vrot.lane.b32.xlu1 %v707_v35, %s1158_s13  ;;  %s972_s13 = sshll.u32 %s1222_s25, 7  ;;  %s1165_s25 = smov [#allocation7]  }
 0x25e   : > { %s1503_s19 = scalar_lea.hbm %s1553_s6, %s972_s13  ;;  %p1088_p12 = pnand %p1087_p6, %p1562_p11 }
 0x25f   : > { %693 = vrot.lane.b32.xlu0 %v691_v47, %s1156_s8  ;;  %s1090_s28 = sshll.u32 %s1165_s25, 4  ;;  %s1091_s28 = int_to_ptr.vmem [resolvable:$false] %s1090_s28 }
 0x260   : > { %p1089_p13 = pneg %p1088_p12  ;;  %s1092_s20 = scalar_lea.vmem %s1091_s28, 256 }
 0x261   : > { %751 = vrot.lane.b32.xlu1 %v748_v37, %s1157_s12  ;;  %p1093_p7 = scmp.lt.s32.totalorder %s1505_s15, %s1091_s28  ;;  %p1094_p10 = scmp.lt.s32.totalorder %s1092_s20, %s1086_s18 }
 0x263   : > { %730 = vrot.lane.b32.xlu0 %v1055_v38, %s1163_s29  ;;  %p1095_p2 = por %p1094_p10, %p1093_p7 }
 0x265   : > { %749 = vrot.lane.b32.xlu1 %v744_v21, %s1157_s12  ;;  %p1096_p4 = pnand %p1095_p2, %p1089_p13 }
 0x267   : > { %753 = vrot.lane.b32.xlu0 %v745_v40, %s1157_s12 }
 0x26b   : > { %775 = vperm.xlu0 %1045, %v772_v61  }
 0x2b1   : > { %v631_v44 = vpop.permute.xlu0 %630 }
 0x2b3   : > { %v615_v45 = vpop.permute.xlu1 %614 }
 0x2b5   : > { %v733_v46 = vpop.permute.xlu0 %732 }
 0x2b6   : > { %v737_v48 = vsel %vm465_vm6, %v733_v46, %v735_v43 }
 0x2b7   : > { %741 = vst [vmem:[#allocation3 + $0x38] sm:$0xf0] %v737_v48  ;;  %v633_v49 = vpop.permute.xlu1 %632 }
 0x2b8   : > { %v635_v50 = vsel %vm324_vm4, %v631_v44, %v633_v49 }
 0x2b9   : > { %639 = vst [vmem:[#allocation3 + $0x8] sm:$0xf0] %v635_v50  ;;  %v670_v54 = vpop.permute.xlu0 %669 }
 0x2bb   : > { %v652_v51 = vpop.permute.xlu1 %651 }
 0x2bd   : > { %v611_v52 = vpop.permute.xlu0 %610 }
 0x2bf   : > { %v629_v53 = vpop.permute.xlu1 %628 }
 0x2c0   : > { %v634_v56 = vsel %vm324_vm4, %v629_v53, %v631_v44 }
 0x2c1   : > { %638 = vst [vmem:[#allocation3] sm:$0xf0] %v634_v56  ;;  %v648_v57 = vpop.permute.xlu0 %647 }
 0x2c3   : > { %v613_v58 = vpop.permute.xlu1 %612 }
 0x2c4   : > { %v616_v60 = vsel %vm305_vm7, %v611_v52, %v613_v58  ;;  %v617_v62 = vsel %vm305_vm7, %v613_v58, %v615_v45 }
 0x2c5   : > { %620 = vst [vmem:[#allocation3] sm:$0xf] %v616_v60  ;;  %621 = vst [vmem:[#allocation3 + $0x8] sm:$0xf] %v617_v62  ;;  %v696_v63 = vpop.permute.xlu0 %695 }
 0x2c6   : > { %v700_v0 = vsel %vm373_vm0, %v696_v63, %v698_v41 }
 0x2c7   : > { %704 = vst [vmem:[#allocation3 + $0x28] sm:$0xf0] %v700_v0  ;;  %v672_v1 = vpop.permute.xlu1 %671 }
 0x2c8   : > { %v674_v2 = vsel %vm389_vm3, %v670_v54, %v672_v1 }
 0x2c9   : > { %678 = vst [vmem:[#allocation3 + $0x18] sm:$0xf0] %v674_v2  ;;  %v650_v3 = vpop.permute.xlu0 %649 }
 0x2ca   : > { %v653_v4 = vsel %vm361_vm5, %v648_v57, %v650_v3  ;;  %v654_v5 = vsel %vm361_vm5, %v650_v3, %v652_v51 }
 0x2cb   : > { %657 = vst [vmem:[#allocation3 + $0x10] sm:$0xf] %v653_v4  ;;  %658 = vst [vmem:[#allocation3 + $0x18] sm:$0xf] %v654_v5  ;;  %v668_v6 = vpop.permute.xlu1 %667 }
 0x2cc   : > { %v673_v55 = vsel %vm389_vm3, %v668_v6, %v670_v54  ;;  %v763_v14 = vld [vmem:[#allocation3 + $0x8] sm:$0xff]  ;;  %v762_v17 = vld [vmem:[#allocation3] sm:$0xff] }
 0x2cd   : > { %677 = vst [vmem:[#allocation3 + $0x10] sm:$0xf0] %v673_v55  ;;  %v715_v7 = vpop.permute.xlu0 %714 }
 0x2ce   : > { %v719_v8 = vsel %vm346_vm2, %v715_v7, %v717_v42  ;;  %v767_v25 = vld [vmem:[#allocation3 + $0x28] sm:$0xff] }
 0x2cf   : > { %723 = vst [vmem:[#allocation3 + $0x38] sm:$0xf] %v719_v8  ;;  %v713_v9 = vpop.permute.xlu1 %712 }
 0x2d0   : > { %v718_v10 = vsel %vm346_vm2, %v713_v9, %v715_v7 }
 0x2d1   : > { %722 = vst [vmem:[#allocation3 + $0x30] sm:$0xf] %v718_v10  ;;  %v694_v12 = vpop.permute.xlu0 %693 }
 0x2d2   : > { %v699_v13 = vsel %vm373_vm0, %v694_v12, %v696_v63  ;;  %v765_v11 = vld [vmem:[#allocation3 + $0x18] sm:$0xff] }
 0x2d3   : > { %703 = vst [vmem:[#allocation3 + $0x20] sm:$0xf0] %v699_v13  ;;  %v752_v15 = vpop.permute.xlu1 %751  ;;  %v981_v16 = vpack.c.bf16 %v765_v11, %v763_v14 }
 0x2d4   : > { %v764_v18 = vld [vmem:[#allocation3 + $0x10] sm:$0xff] }
 0x2d5   : > { %v731_v19 = vpop.permute.xlu0 %730  ;;  %982 = vmatprep.subr.bf16.mxu1 %v981_v16  ;;  %v983_v20 = vpack.c.bf16 %v764_v18, %v762_v17 }
 0x2d6   : > { %v736_v24 = vsel %vm465_vm6, %v731_v19, %v733_v46  ;;  %v769_v26 = vld [vmem:[#allocation3 + $0x38] sm:$0xff] }
 0x2d7   : > { %740 = vst [vmem:[#allocation3 + $0x30] sm:$0xf0] %v736_v24  ;;  %984 = vmatpush1.bf16.msra.mxu1 %v983_v20  ;;  %v750_v27 = vpop.permute.xlu1 %749  ;;  %v985_v28 = vpack.c.bf16 %v769_v26, %v767_v25 }
 0x2d8   : > { %v755_v31 = vsel %vm290_vm1, %v750_v27, %v752_v15 }
 0x2d9   : > { %759 = vst [vmem:[#allocation3 + $0x40] sm:$0xf] %v755_v31  ;;  %v754_v22 = vpop.permute.xlu0 %753  ;;  %986 = vmatprep.subr.bf16.mxu1 %v985_v28 }
 0x2da   : > { %v756_v32 = vsel %vm290_vm1, %v752_v15, %v754_v22  ;;  %v766_v33 = vld [vmem:[#allocation3 + $0x20] sm:$0xff] }
 0x2db   : > { %760 = vst [vmem:[#allocation3 + $0x48] sm:$0xf] %v756_v32 }
 0x2de   : > { %v768_v23 = vld [vmem:[#allocation3 + $0x30] sm:$0xff] }
 0x2df   : > { %v987_v30 = vpack.c.bf16 %v768_v23, %v766_v33 }
 0x2e0   : > { %v770_v35 = vld [vmem:[#allocation3 + $0x40] sm:$0xf] }
 0x2e1   : > { %988 = vmatpush1.bf16.msra.mxu1 %v987_v30 }
 0x2e2   : > { %v771_v29 = vld [vmem:[#allocation3 + $0x48] sm:$0xf] }
 0x2e3   : > { %963 = vmatprep.subr.msk.mxu1 %vm518_vm8, %v771_v29 }
 0x2e5   : > { %964 = vmatpush1.msk.msra.mxu1 %vm518_vm8, %v770_v35 }
 0x2e6   : > { %965 = vmatmul.mubr.msk.f32.vlgmr.msra.gmra.mrb[0].mxu1 %vm514_vm9, %v761_v34 }
 0x2ea   : > { %v776_v39 = vpop.permute.xlu0 %775 }
 0x3b9   : > { %v853_v36 = vpop.f32.mrb[0].mxu1 }
 0x3ba   : > { %v854_v21 = vadd.f32 %v853_v36, %v776_v39  ;;  %v855_v47 = vpop.f32.mrb[1].mxu1 }
 0x3bb   : > { %v856_v37 = vadd.f32 %v855_v47, %v776_v39 }
 0x3bc   : > { %v858_v38 = vmul.f32 0.1, %v854_v21 }
 0x3bd   : > { %v859_v59 = vmul.f32 0.1, %v856_v37 }
 0x3bf   : > { %v862_v40 = vcombine.low %v858_v38, %v859_v59 }
 0x3c1   : > { %864 = vst [vmem:[%s267_s14] sm:$0xff] %v862_v40 }
 0x3c2   : > { %1099 = shalt.err (!%p1096_p4)
}
 0x3c3   : > { %s1100_s26 = scalar_lea.hbm %s1503_s19, 128  ;;  %s1104_s8 = scalar_lea.hbm %s1553_s6, 256 }
 0x3c4   : > { %p1101_p5 = scmp.ne.s32.totalorder %s1503_s19, %s1100_s26  ;;  %p1105_p0 = scmp.lt.u32.totalorder %s1503_s19, %s1553_s6 }
 0x3c5   : > { %p1106_p1 = scmp.lt.u32.totalorder %s1104_s8, %s1100_s26  ;;  %p1108_p6 = scmp.lt.u32.totalorder %s1100_s26, %s1503_s19 }
 0x3c6   : > { %p1102_p8 = pnand %p1101_p5, %p1562_p11 }
 0x3c7   : > { %p1107_p3 = por %p1106_p1, %p1105_p0 }
 0x3c8   : > { %p1103_p9 = pneg %p1102_p8 }
 0x3c9   : > { %p1109_p12 = por %p1108_p6, %p1107_p3 }
 0x3cb   : > { %p1110_p13 = pnand %p1109_p12, %p1103_p9 }
 0x3cd   : > { %1113 = shalt.err (!%p1110_p13)
}
 0x3ce   : > { %991 = dma.vmem_to_hbm [thread:$0]  (%p1562_p11), %s1505_s15, 128, %s1503_s19, %s866_s16  }
 0x3cf PF: > { %s892_s14 = sand.u32 1, %s1140_s21   ;;  %p1563_p7 = scmp.ne.s32.totalorder %s1558_s10, 0 }
 0x3d0   : > { %p1564_p10 = scmp.ge.s32.totalorder %s1152_s24, 2  ;;  %s893_s17 = scalar_lea.sflag [#allocation6], %s892_s14 }
 0x3d2   : > { %p998_p2 = pnand %p1564_p10, %p1563_p7 }
 0x3d4   : > { %1135 = dma.done.wait (!%p998_p2), %s893_s17, 128  }
 0x3d5   : > { %1137 = vsyncadd (!%p998_p2), %s893_s17, 4294967168  ;;  %p19_p4 = scmp.ge.s32.totalorder %s1226_s27, 4   ;;  %s1565_s21 = smov %s1144_s22 }
 0x3d6   : > { %s1566_s22 = smov %s1148_s23  ;;  %s1567_s23 = smov %s1238_s30 }
 0x3d7   : > { %s1568_s24 = smov %s1226_s27  ;;  %21 = sbr.rel (!%p19_p4) target bundleno = 5 (0x5), region = 90 }
 0x3de   :  { %898 = vsyncpa [#allocation5], 1 }
 0x3df   :  { %900 = vsyncpa [#allocation5 + $0x1], 1 }
 0x3e0   :  { %901 = vsyncpa [#allocation6], 1 }
 0x3e1   :  { %903 = vsyncpa [#allocation6 + $0x1], 1 }

</bundles_post_ra>
